<compile_context>
chip_gen: v6e
topology: v6e:2x2x1
jax: 0.10.0
libtpu: 0.0.40
codegen_flags: <defaults>
</compile_context>

<pallas_src>
import functools
import math

import jax
import jax.numpy as jnp
from jax.experimental import pallas as pl
from jax.experimental.pallas import tpu as pltpu


def _ff_kernel(*refs, num_hidden_layers):
    # refs layout: x_ref, (w_ref, b_ref) * (num_hidden_layers + 1), o_ref
    x_ref = refs[0]
    o_ref = refs[-1]
    param_refs = refs[1:-1]

    # MXU operands in native (possibly bf16) dtype; accumulate / bias / ReLU in f32.
    h = x_ref[...]
    for layer in range(num_hidden_layers):
        w = param_refs[2 * layer][...]
        b = param_refs[2 * layer + 1][...]
        acc = jnp.dot(h, w, preferred_element_type=jnp.float32)
        acc = acc + b.astype(jnp.float32)      # (1, N) broadcast bias add
        acc = jnp.maximum(acc, 0.0)            # ReLU on the f32 accumulator (VPU)
        # Intentional: feed the next MXU matmul in the parameter dtype (lossy for bf16).
        h = acc.astype(w.dtype)
    w = param_refs[-2][...]
    b = param_refs[-1][...]
    out = jnp.dot(h, w, preferred_element_type=jnp.float32) + b.astype(jnp.float32)
    o_ref[...] = out.astype(o_ref.dtype)


def _physical_vmem_bytes():
    try:
        return int(pltpu.get_tpu_info().vmem_capacity_bytes)
    except Exception:
        return 64 * 2**20   # conservative: v7x has 64 MiB per TensorCore


def feedforward_pallas(x, weights, biases, *, max_block_batch=512,
                       single_buffer_params=True, cast_to_bf16=False):
    """x: [B, num_inputs]; weights[i]: [in_i, out_i] (transposed vs torch); biases[i]: [1, out_i]."""
    B, num_inputs = x.shape
    num_outputs = weights[-1].shape[1]
    num_hidden_layers = len(weights) - 1

    if cast_to_bf16:
        # bf16 MXU operands with f32 accumulation (kernel already accumulates in f32).
        x = x.astype(jnp.bfloat16)
        weights = [w.astype(jnp.bfloat16) for w in weights]
        biases = [b.astype(jnp.bfloat16) for b in biases]

    # ---- batch tile: full batch if it fits, else 512-row (128-multiple) tiles ----
    # Full-array block dims are always legal; >=128-multiples give full MXU M tiles
    # and valid bf16/int8 sublane packing.  No artificial grid splitting on 1-TC chips.
    tb = B if B <= max_block_batch else max_block_batch
    grid = (pl.cdiv(B, tb),)

    params = []
    for w, b in zip(weights, biases):
        params.extend([w, b])

    # ---- scoped-VMEM estimate (only raise the 32 MiB default when needed) ----
    itemsize = jnp.dtype(x.dtype).itemsize
    param_bytes = sum(p.size * jnp.dtype(p.dtype).itemsize for p in params)
    widest = max([num_inputs, num_outputs] + [w.shape[1] for w in weights])
    default_scoped = 32 * 2**20

    def vmem_limit_for(param_buffers):
        est = (param_buffers * param_bytes                     # resident weights/biases
               + 2 * tb * (num_inputs + num_outputs) * itemsize  # double-buffered x / out tiles
               + 4 * tb * widest * 4)                          # live f32 activation temporaries
        req = est * 3 // 2
        if req <= default_scoped:
            return None                                        # default limit is fine
        return int(min(req, _physical_vmem_bytes() * 3 // 4))  # leave Mosaic headroom

    kernel = functools.partial(_ff_kernel, num_hidden_layers=num_hidden_layers)

    def build(single_buffer):
        # Weights/biases never change across grid steps (constant index_map):
        # single-buffer them to halve their resident VMEM footprint.
        pm = {"pipeline_mode": pl.Buffered(1)} if single_buffer else {}
        in_specs = [pl.BlockSpec((tb, num_inputs), lambda i: (i, 0))]
        for w, b in zip(weights, biases):
            in_specs.append(pl.BlockSpec(w.shape, lambda i: (0, 0), **pm))
            in_specs.append(pl.BlockSpec(b.shape, lambda i: (0, 0), **pm))
        return pl.pallas_call(
            kernel,
            out_shape=jax.ShapeDtypeStruct((B, num_outputs), x.dtype),
            grid_spec=pltpu.PrefetchScalarGridSpec(
                num_scalar_prefetch=0,
                grid=grid,
                in_specs=in_specs,
                out_specs=pl.BlockSpec((tb, num_outputs), lambda i: (i, 0)),
            ),
            compiler_params=pltpu.CompilerParams(
                dimension_semantics=("parallel",),
                vmem_limit_bytes=vmem_limit_for(1 if single_buffer else 2),
            ),
        )

    if single_buffer_params:
        try:
            return build(True)(x, *params)
        except Exception:
            # Some Pallas/Mosaic versions reject buffer_count=1 for pipelined blocks.
            # A genuine kernel error would also fail the double-buffered retry below
            # and propagate, so real problems are not masked (only re-traced once).
            pass
    return build(False)(x, *params)


def init_feedforward_params(key, num_inputs, num_outputs, num_hidden=8, num_layers=1):
    """Deterministic init mimicking nn.Linear default (uniform(-1/sqrt(fan_in), ...))."""
    dims = [num_inputs] + [num_hidden] * num_layers + [num_outputs]
    weights, biases = [], []
    for i in range(len(dims) - 1):
        fan_in, fan_out = dims[i], dims[i + 1]
        key, wk, bk = jax.random.split(key, 3)
        bound = 1.0 / math.sqrt(fan_in)
        weights.append(jax.random.uniform(wk, (fan_in, fan_out), jnp.float32, -bound, bound))
        biases.append(jax.random.uniform(bk, (1, fan_out), jnp.float32, -bound, bound))
    return weights, biases


def feedforward_ref(x, weights, biases):
    h = x
    for w, b in zip(weights[:-1], biases[:-1]):
        h = jnp.maximum(h @ w + b, 0.0)
    return h @ weights[-1] + biases[-1]


if __name__ == "__main__":
    # Module config: num_hidden=8, num_layers=2, relu, no norm/dropout.
    batch, num_inputs, num_hidden, num_outputs, num_layers = 64, 16, 8, 4, 2

    key = jax.random.PRNGKey(0)
    key, xk = jax.random.split(key)
    x = jax.random.normal(xk, (batch, num_inputs), jnp.float32)

    weights, biases = init_feedforward_params(
        key, num_inputs, num_outputs, num_hidden=num_hidden, num_layers=num_layers
    )
    ref = feedforward_ref(x, weights, biases)

    # f32 path (matches the PyTorch module numerics).
    out = jax.block_until_ready(feedforward_pallas(x, weights, biases))
    assert out.shape == (batch, num_outputs)
    assert jnp.allclose(out, ref, atol=1e-4, rtol=1e-4), "f32 mismatch vs. JAX reference"

    # bf16 operands with f32 accumulation (recommended fast MXU path).
    out_bf = jax.block_until_ready(feedforward_pallas(x, weights, biases, cast_to_bf16=True))
    assert out_bf.shape == (batch, num_outputs)
    assert jnp.allclose(out_bf.astype(jnp.float32), ref, atol=1e-1, rtol=1e-1), \
        "bf16 mismatch vs. JAX reference"

    print("KERNEL_OK")
</pallas_src>

<mosaic_0001>
module attributes {stable_mosaic.version = 11 : i64} {
  func.func @_ff_kernel(%arg0: i32, %arg1: memref<64x16xf32, #tpu.memory_space<vmem>>, %arg2: memref<16x8xf32, #tpu.memory_space<vmem>>, %arg3: memref<1x8xf32, #tpu.memory_space<vmem>>, %arg4: memref<8x8xf32, #tpu.memory_space<vmem>>, %arg5: memref<1x8xf32, #tpu.memory_space<vmem>>, %arg6: memref<8x4xf32, #tpu.memory_space<vmem>>, %arg7: memref<1x4xf32, #tpu.memory_space<vmem>>, %arg8: memref<64x4xf32, #tpu.memory_space<vmem>>) attributes {dimension_semantics = [#tpu.dimension_semantics<parallel>], iteration_bounds = array<i64: 1>, scalar_prefetch = 0 : i64, scratch_operands = 0 : i64, tpu.core_type = #tpu.core_type<tc>, window_params = [{transform_indices = @transform_0, window_bounds = array<i64: 64, 16>}, {pipeline_mode = #tpu.pipeline_mode<synchronous>, transform_indices = @transform_1, window_bounds = array<i64: 16, 8>}, {pipeline_mode = #tpu.pipeline_mode<synchronous>, transform_indices = @transform_2, window_bounds = array<i64: 1, 8>}, {pipeline_mode = #tpu.pipeline_mode<synchronous>, transform_indices = @transform_3, window_bounds = array<i64: 8, 8>}, {pipeline_mode = #tpu.pipeline_mode<synchronous>, transform_indices = @transform_4, window_bounds = array<i64: 1, 8>}, {pipeline_mode = #tpu.pipeline_mode<synchronous>, transform_indices = @transform_5, window_bounds = array<i64: 8, 4>}, {pipeline_mode = #tpu.pipeline_mode<synchronous>, transform_indices = @transform_6, window_bounds = array<i64: 1, 4>}, {transform_indices = @transform_7, window_bounds = array<i64: 64, 4>}]} {
    %c0 = arith.constant 0 : index
    %c0_0 = arith.constant 0 : index
    %0 = vector.load %arg1[%c0, %c0_0] : memref<64x16xf32, #tpu.memory_space<vmem>>, vector<64x16xf32>
    %c0_1 = arith.constant 0 : index
    %c0_2 = arith.constant 0 : index
    %1 = vector.load %arg2[%c0_1, %c0_2] : memref<16x8xf32, #tpu.memory_space<vmem>>, vector<16x8xf32>
    %c0_3 = arith.constant 0 : index
    %c0_4 = arith.constant 0 : index
    %2 = vector.load %arg3[%c0_3, %c0_4] : memref<1x8xf32, #tpu.memory_space<vmem>>, vector<1x8xf32>
    %cst = arith.constant dense<0.000000e+00> : vector<64x8xf32>
    %3 = tpu.matmul %0, %1, %cst {dimension_numbers = #tpu.dot_dimension_numbers<[1], [0], [0], [1], [0, 0, 1, 1], [], []>} : vector<64x16xf32>, vector<16x8xf32>, vector<64x8xf32> -> vector<64x8xf32>
    %4 = vector.broadcast %2 : vector<1x8xf32> to vector<64x8xf32>
    %5 = arith.addf %3, %4 : vector<64x8xf32>
    %cst_5 = arith.constant 0.000000e+00 : f32
    %6 = vector.broadcast %cst_5 : f32 to vector<64x8xf32>
    %7 = arith.maximumf %5, %6 : vector<64x8xf32>
    %c0_6 = arith.constant 0 : index
    %c0_7 = arith.constant 0 : index
    %8 = vector.load %arg4[%c0_6, %c0_7] : memref<8x8xf32, #tpu.memory_space<vmem>>, vector<8x8xf32>
    %c0_8 = arith.constant 0 : index
    %c0_9 = arith.constant 0 : index
    %9 = vector.load %arg5[%c0_8, %c0_9] : memref<1x8xf32, #tpu.memory_space<vmem>>, vector<1x8xf32>
    %cst_10 = arith.constant dense<0.000000e+00> : vector<64x8xf32>
    %10 = tpu.matmul %7, %8, %cst_10 {dimension_numbers = #tpu.dot_dimension_numbers<[1], [0], [0], [1], [0, 0, 1, 1], [], []>} : vector<64x8xf32>, vector<8x8xf32>, vector<64x8xf32> -> vector<64x8xf32>
    %11 = vector.broadcast %9 : vector<1x8xf32> to vector<64x8xf32>
    %12 = arith.addf %10, %11 : vector<64x8xf32>
    %cst_11 = arith.constant 0.000000e+00 : f32
    %13 = vector.broadcast %cst_11 : f32 to vector<64x8xf32>
    %14 = arith.maximumf %12, %13 : vector<64x8xf32>
    %c0_12 = arith.constant 0 : index
    %c0_13 = arith.constant 0 : index
    %15 = vector.load %arg6[%c0_12, %c0_13] : memref<8x4xf32, #tpu.memory_space<vmem>>, vector<8x4xf32>
    %c0_14 = arith.constant 0 : index
    %c0_15 = arith.constant 0 : index
    %16 = vector.load %arg7[%c0_14, %c0_15] : memref<1x4xf32, #tpu.memory_space<vmem>>, vector<1x4xf32>
    %cst_16 = arith.constant dense<0.000000e+00> : vector<64x4xf32>
    %17 = tpu.matmul %14, %15, %cst_16 {dimension_numbers = #tpu.dot_dimension_numbers<[1], [0], [0], [1], [0, 0, 1, 1], [], []>} : vector<64x8xf32>, vector<8x4xf32>, vector<64x4xf32> -> vector<64x4xf32>
    %18 = vector.broadcast %16 : vector<1x4xf32> to vector<64x4xf32>
    %19 = arith.addf %17, %18 : vector<64x4xf32>
    %c0_17 = arith.constant 0 : index
    %c0_18 = arith.constant 0 : index
    %20 = vector.load %arg8[%c0_17, %c0_18] : memref<64x4xf32, #tpu.memory_space<vmem>>, vector<64x4xf32>
    tpu.vector_store %arg8[%c0_17, %c0_18], %19 {strides = array<i32>} : memref<64x4xf32, #tpu.memory_space<vmem>>, vector<64x4xf32>,
    return
  }
  func.func @transform_0(%arg0: i32) -> (i32, i32) {
    %c0_i32 = arith.constant 0 : i32
    %c0_i32_0 = arith.constant 0 : i32
    return %arg0, %c0_i32 : i32, i32
  }
  func.func @transform_1(%arg0: i32) -> (i32, i32) {
    %c0_i32 = arith.constant 0 : i32
    %c0_i32_0 = arith.constant 0 : i32
    %c0_i32_1 = arith.constant 0 : i32
    return %c0_i32, %c0_i32_0 : i32, i32
  }
  func.func @transform_2(%arg0: i32) -> (i32, i32) {
    %c0_i32 = arith.constant 0 : i32
    %c0_i32_0 = arith.constant 0 : i32
    %c0_i32_1 = arith.constant 0 : i32
    return %c0_i32, %c0_i32_0 : i32, i32
  }
  func.func @transform_3(%arg0: i32) -> (i32, i32) {
    %c0_i32 = arith.constant 0 : i32
    %c0_i32_0 = arith.constant 0 : i32
    %c0_i32_1 = arith.constant 0 : i32
    return %c0_i32, %c0_i32_0 : i32, i32
  }
  func.func @transform_4(%arg0: i32) -> (i32, i32) {
    %c0_i32 = arith.constant 0 : i32
    %c0_i32_0 = arith.constant 0 : i32
    %c0_i32_1 = arith.constant 0 : i32
    return %c0_i32, %c0_i32_0 : i32, i32
  }
  func.func @transform_5(%arg0: i32) -> (i32, i32) {
    %c0_i32 = arith.constant 0 : i32
    %c0_i32_0 = arith.constant 0 : i32
    %c0_i32_1 = arith.constant 0 : i32
    return %c0_i32, %c0_i32_0 : i32, i32
  }
  func.func @transform_6(%arg0: i32) -> (i32, i32) {
    %c0_i32 = arith.constant 0 : i32
    %c0_i32_0 = arith.constant 0 : i32
    %c0_i32_1 = arith.constant 0 : i32
    return %c0_i32, %c0_i32_0 : i32, i32
  }
  func.func @transform_7(%arg0: i32) -> (i32, i32) {
    %c0_i32 = arith.constant 0 : i32
    %c0_i32_0 = arith.constant 0 : i32
    return %arg0, %c0_i32 : i32, i32
  }
}

module attributes {stable_mosaic.version = 11 : i64} {
  func.func @_ff_kernel(%arg0: i32, %arg1: memref<64x16xf32, #tpu.memory_space<vmem>>, %arg2: memref<16x8xf32, #tpu.memory_space<vmem>>, %arg3: memref<1x8xf32, #tpu.memory_space<vmem>>, %arg4: memref<8x8xf32, #tpu.memory_space<vmem>>, %arg5: memref<1x8xf32, #tpu.memory_space<vmem>>, %arg6: memref<8x4xf32, #tpu.memory_space<vmem>>, %arg7: memref<1x4xf32, #tpu.memory_space<vmem>>, %arg8: memref<64x4xf32, #tpu.memory_space<vmem>>) attributes {dimension_semantics = [#tpu.dimension_semantics<parallel>], iteration_bounds = array<i64: 1>, scalar_prefetch = 0 : i64, scratch_operands = 0 : i64, tpu.core_type = #tpu.core_type<tc>, window_params = [{transform_indices = @transform_0, window_bounds = array<i64: 64, 16>}, {pipeline_mode = #tpu.pipeline_mode<synchronous>, transform_indices = @transform_1, window_bounds = array<i64: 16, 8>}, {pipeline_mode = #tpu.pipeline_mode<synchronous>, transform_indices = @transform_2, window_bounds = array<i64: 1, 8>}, {pipeline_mode = #tpu.pipeline_mode<synchronous>, transform_indices = @transform_3, window_bounds = array<i64: 8, 8>}, {pipeline_mode = #tpu.pipeline_mode<synchronous>, transform_indices = @transform_4, window_bounds = array<i64: 1, 8>}, {pipeline_mode = #tpu.pipeline_mode<synchronous>, transform_indices = @transform_5, window_bounds = array<i64: 8, 4>}, {pipeline_mode = #tpu.pipeline_mode<synchronous>, transform_indices = @transform_6, window_bounds = array<i64: 1, 4>}, {transform_indices = @transform_7, window_bounds = array<i64: 64, 4>}]} {
    %c0 = arith.constant 0 : index
    %c0_0 = arith.constant 0 : index
    %0 = vector.load %arg1[%c0, %c0_0] : memref<64x16xf32, #tpu.memory_space<vmem>>, vector<64x16xf32>
    %c0_1 = arith.constant 0 : index
    %c0_2 = arith.constant 0 : index
    %1 = vector.load %arg2[%c0_1, %c0_2] : memref<16x8xf32, #tpu.memory_space<vmem>>, vector<16x8xf32>
    %c0_3 = arith.constant 0 : index
    %c0_4 = arith.constant 0 : index
    %2 = vector.load %arg3[%c0_3, %c0_4] : memref<1x8xf32, #tpu.memory_space<vmem>>, vector<1x8xf32>
    %cst = arith.constant dense<0.000000e+00> : vector<64x8xf32>
    %3 = tpu.matmul %0, %1, %cst {dimension_numbers = #tpu.dot_dimension_numbers<[1], [0], [0], [1], [0, 0, 1, 1], [], []>} : vector<64x16xf32>, vector<16x8xf32>, vector<64x8xf32> -> vector<64x8xf32>
    %4 = vector.broadcast %2 : vector<1x8xf32> to vector<64x8xf32>
    %5 = arith.addf %3, %4 : vector<64x8xf32>
    %cst_5 = arith.constant 0.000000e+00 : f32
    %6 = vector.broadcast %cst_5 : f32 to vector<64x8xf32>
    %7 = arith.maximumf %5, %6 : vector<64x8xf32>
    %c0_6 = arith.constant 0 : index
    %c0_7 = arith.constant 0 : index
    %8 = vector.load %arg4[%c0_6, %c0_7] : memref<8x8xf32, #tpu.memory_space<vmem>>, vector<8x8xf32>
    %c0_8 = arith.constant 0 : index
    %c0_9 = arith.constant 0 : index
    %9 = vector.load %arg5[%c0_8, %c0_9] : memref<1x8xf32, #tpu.memory_space<vmem>>, vector<1x8xf32>
    %cst_10 = arith.constant dense<0.000000e+00> : vector<64x8xf32>
    %10 = tpu.matmul %7, %8, %cst_10 {dimension_numbers = #tpu.dot_dimension_numbers<[1], [0], [0], [1], [0, 0, 1, 1], [], []>} : vector<64x8xf32>, vector<8x8xf32>, vector<64x8xf32> -> vector<64x8xf32>
    %11 = vector.broadcast %9 : vector<1x8xf32> to vector<64x8xf32>
    %12 = arith.addf %10, %11 : vector<64x8xf32>
    %cst_11 = arith.constant 0.000000e+00 : f32
    %13 = vector.broadcast %cst_11 : f32 to vector<64x8xf32>
    %14 = arith.maximumf %12, %13 : vector<64x8xf32>
    %c0_12 = arith.constant 0 : index
    %c0_13 = arith.constant 0 : index
    %15 = vector.load %arg6[%c0_12, %c0_13] : memref<8x4xf32, #tpu.memory_space<vmem>>, vector<8x4xf32>
    %c0_14 = arith.constant 0 : index
    %c0_15 = arith.constant 0 : index
    %16 = vector.load %arg7[%c0_14, %c0_15] : memref<1x4xf32, #tpu.memory_space<vmem>>, vector<1x4xf32>
    %cst_16 = arith.constant dense<0.000000e+00> : vector<64x4xf32>
    %17 = tpu.matmul %14, %15, %cst_16 {dimension_numbers = #tpu.dot_dimension_numbers<[1], [0], [0], [1], [0, 0, 1, 1], [], []>} : vector<64x8xf32>, vector<8x4xf32>, vector<64x4xf32> -> vector<64x4xf32>
    %18 = vector.broadcast %16 : vector<1x4xf32> to vector<64x4xf32>
    %19 = arith.addf %17, %18 : vector<64x4xf32>
    %c0_17 = arith.constant 0 : index
    %c0_18 = arith.constant 0 : index
    %20 = vector.load %arg8[%c0_17, %c0_18] : memref<64x4xf32, #tpu.memory_space<vmem>>, vector<64x4xf32>
    tpu.vector_store %arg8[%c0_17, %c0_18], %19 {strides = array<i32>} : memref<64x4xf32, #tpu.memory_space<vmem>>, vector<64x4xf32>,
    return
  }
  func.func @transform_0(%arg0: i32) -> (i32, i32) {
    %c0_i32 = arith.constant 0 : i32
    %c0_i32_0 = arith.constant 0 : i32
    return %arg0, %c0_i32 : i32, i32
  }
  func.func @transform_1(%arg0: i32) -> (i32, i32) {
    %c0_i32 = arith.constant 0 : i32
    %c0_i32_0 = arith.constant 0 : i32
    %c0_i32_1 = arith.constant 0 : i32
    return %c0_i32, %c0_i32_0 : i32, i32
  }
  func.func @transform_2(%arg0: i32) -> (i32, i32) {
    %c0_i32 = arith.constant 0 : i32
    %c0_i32_0 = arith.constant 0 : i32
    %c0_i32_1 = arith.constant 0 : i32
    return %c0_i32, %c0_i32_0 : i32, i32
  }
  func.func @transform_3(%arg0: i32) -> (i32, i32) {
    %c0_i32 = arith.constant 0 : i32
    %c0_i32_0 = arith.constant 0 : i32
    %c0_i32_1 = arith.constant 0 : i32
    return %c0_i32, %c0_i32_0 : i32, i32
  }
  func.func @transform_4(%arg0: i32) -> (i32, i32) {
    %c0_i32 = arith.constant 0 : i32
    %c0_i32_0 = arith.constant 0 : i32
    %c0_i32_1 = arith.constant 0 : i32
    return %c0_i32, %c0_i32_0 : i32, i32
  }
  func.func @transform_5(%arg0: i32) -> (i32, i32) {
    %c0_i32 = arith.constant 0 : i32
    %c0_i32_0 = arith.constant 0 : i32
    %c0_i32_1 = arith.constant 0 : i32
    return %c0_i32, %c0_i32_0 : i32, i32
  }
  func.func @transform_6(%arg0: i32) -> (i32, i32) {
    %c0_i32 = arith.constant 0 : i32
    %c0_i32_0 = arith.constant 0 : i32
    %c0_i32_1 = arith.constant 0 : i32
    return %c0_i32, %c0_i32_0 : i32, i32
  }
  func.func @transform_7(%arg0: i32) -> (i32, i32) {
    %c0_i32 = arith.constant 0 : i32
    %c0_i32_0 = arith.constant 0 : i32
    return %arg0, %c0_i32 : i32, i32
  }
}

</mosaic_0001>

<bundles_post_ra>
// kernel: tpu_custom_call.1
= control target key start
LH: loop header
LB: loop body
LE: loop exit
PB: predicated region body
PF: predicated region fallthrough
CT: control target
= control target key end

     0   :  { %vm43_vm0 = vcmask 130048   ;;  %vm189_vm1 = vcmask 64512   ;;  %vm464_vm2 = vcmask 31744   ;;  %s719_s1 = inlined_call_operand.vmem [shape: f32[16,8], index: 1, kind: input, shape index: {}]   ;;  %s720_s0 = inlined_call_operand.vmem [shape: f32[64,16], index: 0, kind: input, shape index: {}]   ;;  %s721_s3 = inlined_call_operand.vmem [shape: f32[8,8], index: 3, kind: input, shape index: {}]   ;;  %s722_s5 = inlined_call_operand.vmem [shape: f32[8,4], index: 5, kind: input, shape index: {}]   ;;  %s723_s2 = inlined_call_operand.vmem [shape: f32[1,8], index: 2, kind: input, shape index: {}]   ;;  %s724_s4 = inlined_call_operand.vmem [shape: f32[1,8], index: 4, kind: input, shape index: {}]   ;;  %s725_s6 = inlined_call_operand.vmem [shape: f32[1,4], index: 6, kind: input, shape index: {}]   ;;  %s726_s7 = inlined_call_operand.vmem [shape: f32[64,4], index: 7, kind: output, shape index: {}]  }
   0x1   :  { %v35_v0 = vld [vmem:[%s719_s1 + $0x8] sm:$0xff]  ;;  %v34_v1 = vld [vmem:[%s719_s1] sm:$0xff]  ;;  %v28_v4 = vld [vmem:[%s720_s0 + $0x10] sm:$0xff] }
   0x2   :  { %v26_v2 = vld [vmem:[%s720_s0] sm:$0xff]  ;;  %532 = vmatprep.subr.mxu0 %v35_v0  ;;  %v27_v3 = vld [vmem:[%s720_s0 + $0x8] sm:$0xff]  ;;  %v29_v6 = vld [vmem:[%s720_s0 + $0x18] sm:$0xff] }
   0x3   :  { %536 = vmatprep.mubr.msk.f32.mxu0 %vm43_vm0, %v26_v2  ;;  %533 = vmatpush3.msra.mxu0 %v35_v0  ;;  %v181_v5 = vld [vmem:[%s721_s3] sm:$0xff]  ;;  %v31_v8 = vld [vmem:[%s720_s0 + $0x28] sm:$0xff]  ;;  %v32_v9 = vld [vmem:[%s720_s0 + $0x30] sm:$0xff] }
   0x4   :  { %534 = vmatprep.subr.mxu0 %v34_v1  ;;  %576 = vmatprep.subr.mxu1 %v181_v5  ;;  %v30_v7 = vld [vmem:[%s720_s0 + $0x20] sm:$0xff]  ;;  %v33_v10 = vld [vmem:[%s720_s0 + $0x38] sm:$0xff] }
   0x5   :  { %535 = vmatpush3.msra.mxu0 %v34_v1  ;;  %577 = vmatpush3.msra.mxu1 %v181_v5  ;;  %v327_v11 = vld [vmem:[%s722_s5] sm:$0xff] }
   0x6   :  { %537 = vmatmul.mubr.msk.f32.vlgmr.msra.gmra.mxu0 %vm43_vm0, %v27_v3  ;;  %548 = vmatprep.subr.mxu0 %v181_v5  ;;  %v477_v12 = vld [vmem:[%s723_s2] ss:$0 sm:$0xff] }
   0x7   :  { %539 = vmatprep.mubr.msk.f32.mxu0 %vm43_vm0, %v28_v4  ;;  %549 = vmatpush3.msra.mxu0 %v181_v5  ;;  %v486_v37 = vld [vmem:[%s724_s4] ss:$0 sm:$0xff] }
   0x8   :  { %562 = vmatprep.subr.mxu1 %v327_v11  ;;  %v495_v62 = vld [vmem:[%s725_s6] ss:$0 sm:$0xff] }
   0xa   :  { %540 = vmatmul.mubr.msk.f32.gmra.mxu0 %vm43_vm0, %v29_v6 }
   0xb   :  { %542 = vmatprep.mubr.msk.f32.mxu0 %vm43_vm0, %v30_v7 }
   0xe   :  { %543 = vmatmul.mubr.msk.f32.gmra.mxu0 %vm43_vm0, %v31_v8 }
   0xf   :  { %545 = vmatprep.mubr.msk.f32.mxu0 %vm43_vm0, %v32_v9 }
  0x12   :  { %546 = vmatmul.mubr.msk.f32.gmra.mxu0 %vm43_vm0, %v33_v10 }
  0xc6   :  { %v538_v13 = vpop.f32.mrf.mxu0 }
  0xc7   :  { %v140_v14 = vadd.f32 %v538_v13, %v477_v12 }
  0xc8   :  { %v134_v15 = vpop.f32.mrf.mxu0 }
  0xc9   :  { %v135_v16 = vadd.f32 %v477_v12, %v134_v15  ;;  %v174_v19 = vmax.f32 %v140_v14, 0.0 }
  0xca   :  { %v541_v17 = vpop.f32.mrf.mxu0 }
  0xcb   :  { %v173_v18 = vmax.f32 %v135_v16, 0.0  ;;  %v150_v20 = vadd.f32 %v541_v17, %v477_v12 }
  0xcc   :  { %v144_v21 = vpop.f32.mrf.mxu0 }
  0xcd   :  { %v145_v22 = vadd.f32 %v477_v12, %v144_v21  ;;  %550 = vmatprep.mubr.msk.f32.mxu0 %vm189_vm1, %v173_v18  ;;  %v176_v25 = vmax.f32 %v150_v20, 0.0 }
  0xce   :  { %v544_v23 = vpop.f32.mrf.mxu0  ;;  %551 = vmatmul.mubr.msk.f32.vlgmr.msra.gmra.mxu0 %vm189_vm1, %v174_v19 }
  0xcf   :  { %v175_v24 = vmax.f32 %v145_v22, 0.0  ;;  %v160_v26 = vadd.f32 %v544_v23, %v477_v12 }
  0xd0   :  { %v154_v27 = vpop.f32.mrf.mxu0 }
  0xd1   :  { %v155_v28 = vadd.f32 %v477_v12, %v154_v27  ;;  %553 = vmatprep.mubr.msk.f32.mxu1 %vm189_vm1, %v175_v24  ;;  %v178_v31 = vmax.f32 %v160_v26, 0.0 }
  0xd2   :  { %v547_v29 = vpop.f32.mrf.mxu0  ;;  %554 = vmatmul.mubr.msk.f32.vlgmr.msra.gmra.mxu1 %vm189_vm1, %v176_v25 }
  0xd3   :  { %v177_v30 = vmax.f32 %v155_v28, 0.0  ;;  %563 = vmatpush3.msra.mxu1 %v327_v11  ;;  %v170_v32 = vadd.f32 %v547_v29, %v477_v12 }
  0xd4   :  { %v164_v33 = vpop.f32.mrf.mxu0 }
  0xd5   :  { %v165_v34 = vadd.f32 %v477_v12, %v164_v33  ;;  %556 = vmatprep.mubr.msk.f32.mxu1 %vm189_vm1, %v177_v30  ;;  %v180_v36 = vmax.f32 %v170_v32, 0.0 }
  0xd6   :  { %557 = vmatmul.mubr.msk.f32.gmra.mxu1 %vm189_vm1, %v178_v31 }
  0xd7   :  { %v179_v35 = vmax.f32 %v165_v34, 0.0 }
  0xd9   :  { %559 = vmatprep.mubr.msk.f32.mxu1 %vm189_vm1, %v179_v35 }
  0xda   :  { %560 = vmatmul.mubr.msk.f32.gmra.mxu1 %vm189_vm1, %v180_v36 }
 0x18e   :  { %v552_v38 = vpop.f32.mrf.mxu0 }
 0x18f   :  { %v286_v39 = vadd.f32 %v552_v38, %v486_v37 }
 0x190   :  { %v280_v40 = vpop.f32.mrf.mxu0 }
 0x191   :  { %v281_v41 = vadd.f32 %v486_v37, %v280_v40  ;;  %v320_v44 = vmax.f32 %v286_v39, 0.0 }
 0x192   :  { %v555_v42 = vpop.f32.mrf.mxu1 }
 0x193   :  { %v319_v43 = vmax.f32 %v281_v41, 0.0  ;;  %v296_v45 = vadd.f32 %v555_v42, %v486_v37 }
 0x194   :  { %v290_v46 = vpop.f32.mrf.mxu1 }
 0x195   :  { %v291_v47 = vadd.f32 %v486_v37, %v290_v46  ;;  %564 = vmatprep.mubr.msk.f32.mxu1 %vm189_vm1, %v319_v43  ;;  %v322_v50 = vmax.f32 %v296_v45, 0.0 }
 0x196   :  { %v558_v48 = vpop.f32.mrf.mxu1  ;;  %565 = vmatmul.mubr.msk.f32.vlgmr.msra.gmra.mxu1 %vm189_vm1, %v320_v44 }
 0x197   :  { %v321_v49 = vmax.f32 %v291_v47, 0.0  ;;  %v306_v51 = vadd.f32 %v558_v48, %v486_v37 }
 0x198   :  { %v300_v52 = vpop.f32.mrf.mxu1 }
 0x199   :  { %v301_v53 = vadd.f32 %v486_v37, %v300_v52  ;;  %567 = vmatprep.mubr.msk.f32.mxu1 %vm189_vm1, %v321_v49  ;;  %v324_v56 = vmax.f32 %v306_v51, 0.0 }
 0x19a   :  { %v561_v54 = vpop.f32.mrf.mxu1  ;;  %568 = vmatmul.mubr.msk.f32.gmra.mxu1 %vm189_vm1, %v322_v50 }
 0x19b   :  { %v323_v55 = vmax.f32 %v301_v53, 0.0  ;;  %v316_v57 = vadd.f32 %v561_v54, %v486_v37 }
 0x19c   :  { %v310_v58 = vpop.f32.mrf.mxu1 }
 0x19d   :  { %v311_v59 = vadd.f32 %v486_v37, %v310_v58  ;;  %570 = vmatprep.mubr.msk.f32.mxu1 %vm189_vm1, %v323_v55  ;;  %v326_v61 = vmax.f32 %v316_v57, 0.0 }
 0x19e   :  { %571 = vmatmul.mubr.msk.f32.gmra.mxu1 %vm189_vm1, %v324_v56 }
 0x19f   :  { %v325_v60 = vmax.f32 %v311_v59, 0.0 }
 0x1a1   :  { %573 = vmatprep.mubr.msk.f32.mxu1 %vm189_vm1, %v325_v60 }
 0x1a2   :  { %574 = vmatmul.mubr.msk.f32.gmra.mxu1 %vm189_vm1, %v326_v61 }
 0x256   :  { %v566_v63 = vpop.f32.mrf.mxu1 }
 0x257   :  { %v431_v0 = vadd.f32 %v566_v63, %v495_v62 }
 0x258   :  { %v425_v1 = vpop.f32.mrf.mxu1 }
 0x259   :  { %466 = vst.msk [vmem:[%s726_s7 + $0x8] sm:$0xff] %vm464_vm2, %v431_v0  ;;  %v426_v2 = vadd.f32 %v495_v62, %v425_v1 }
 0x25a   :  { %v569_v3 = vpop.f32.mrf.mxu1 }
 0x25b   :  { %465 = vst.msk [vmem:[%s726_s7] sm:$0xff] %vm464_vm2, %v426_v2  ;;  %v441_v4 = vadd.f32 %v569_v3, %v495_v62 }
 0x25c   :  { %v435_v5 = vpop.f32.mrf.mxu1 }
 0x25d   :  { %468 = vst.msk [vmem:[%s726_s7 + $0x18] sm:$0xff] %vm464_vm2, %v441_v4  ;;  %v436_v6 = vadd.f32 %v495_v62, %v435_v5 }
 0x25e   :  { %v572_v7 = vpop.f32.mrf.mxu1 }
 0x25f   :  { %467 = vst.msk [vmem:[%s726_s7 + $0x10] sm:$0xff] %vm464_vm2, %v436_v6  ;;  %v451_v8 = vadd.f32 %v572_v7, %v495_v62 }
 0x260   :  { %v445_v9 = vpop.f32.mrf.mxu1 }
 0x261   :  { %470 = vst.msk [vmem:[%s726_s7 + $0x28] sm:$0xff] %vm464_vm2, %v451_v8  ;;  %v446_v10 = vadd.f32 %v495_v62, %v445_v9 }
 0x262   :  { %v575_v11 = vpop.f32.mrf.mxu1 }
 0x263   :  { %469 = vst.msk [vmem:[%s726_s7 + $0x20] sm:$0xff] %vm464_vm2, %v446_v10  ;;  %v461_v12 = vadd.f32 %v575_v11, %v495_v62 }
 0x264   :  { %v455_v13 = vpop.f32.mrf.mxu1 }
 0x265   :  { %472 = vst.msk [vmem:[%s726_s7 + $0x38] sm:$0xff] %vm464_vm2, %v461_v12  ;;  %v456_v14 = vadd.f32 %v495_v62, %v455_v13 }
 0x267   :  { %471 = vst.msk [vmem:[%s726_s7 + $0x30] sm:$0xff] %vm464_vm2, %v456_v14 }

// kernel: tpu_custom_call.1
= control target key start
LH: loop header
LB: loop body
LE: loop exit
PB: predicated region body
PF: predicated region fallthrough
CT: control target
= control target key end

     0   :  { %vm43_vm0 = vcmask 130048   ;;  %vm189_vm1 = vcmask 64512   ;;  %vm464_vm2 = vcmask 31744   ;;  %s719_s1 = inlined_call_operand.vmem [shape: f32[16,8], index: 1, kind: input, shape index: {}]   ;;  %s720_s0 = inlined_call_operand.vmem [shape: f32[64,16], index: 0, kind: input, shape index: {}]   ;;  %s721_s3 = inlined_call_operand.vmem [shape: f32[8,8], index: 3, kind: input, shape index: {}]   ;;  %s722_s5 = inlined_call_operand.vmem [shape: f32[8,4], index: 5, kind: input, shape index: {}]   ;;  %s723_s2 = inlined_call_operand.vmem [shape: f32[1,8], index: 2, kind: input, shape index: {}]   ;;  %s724_s4 = inlined_call_operand.vmem [shape: f32[1,8], index: 4, kind: input, shape index: {}]   ;;  %s725_s6 = inlined_call_operand.vmem [shape: f32[1,4], index: 6, kind: input, shape index: {}]   ;;  %s726_s7 = inlined_call_operand.vmem [shape: f32[64,4], index: 7, kind: output, shape index: {}]  }
   0x1   :  { %v35_v0 = vld [vmem:[%s719_s1 + $0x8] sm:$0xff]  ;;  %v34_v1 = vld [vmem:[%s719_s1] sm:$0xff]  ;;  %v28_v4 = vld [vmem:[%s720_s0 + $0x10] sm:$0xff] }
   0x2   :  { %v26_v2 = vld [vmem:[%s720_s0] sm:$0xff]  ;;  %532 = vmatprep.subr.mxu0 %v35_v0  ;;  %v27_v3 = vld [vmem:[%s720_s0 + $0x8] sm:$0xff]  ;;  %v29_v6 = vld [vmem:[%s720_s0 + $0x18] sm:$0xff] }
   0x3   :  { %536 = vmatprep.mubr.msk.f32.mxu0 %vm43_vm0, %v26_v2  ;;  %533 = vmatpush3.msra.mxu0 %v35_v0  ;;  %v181_v5 = vld [vmem:[%s721_s3] sm:$0xff]  ;;  %v31_v8 = vld [vmem:[%s720_s0 + $0x28] sm:$0xff]  ;;  %v32_v9 = vld [vmem:[%s720_s0 + $0x30] sm:$0xff] }
   0x4   :  { %534 = vmatprep.subr.mxu0 %v34_v1  ;;  %576 = vmatprep.subr.mxu1 %v181_v5  ;;  %v30_v7 = vld [vmem:[%s720_s0 + $0x20] sm:$0xff]  ;;  %v33_v10 = vld [vmem:[%s720_s0 + $0x38] sm:$0xff] }
   0x5   :  { %535 = vmatpush3.msra.mxu0 %v34_v1  ;;  %577 = vmatpush3.msra.mxu1 %v181_v5  ;;  %v327_v11 = vld [vmem:[%s722_s5] sm:$0xff] }
   0x6   :  { %537 = vmatmul.mubr.msk.f32.vlgmr.msra.gmra.mxu0 %vm43_vm0, %v27_v3  ;;  %548 = vmatprep.subr.mxu0 %v181_v5  ;;  %v477_v12 = vld [vmem:[%s723_s2] ss:$0 sm:$0xff] }
   0x7   :  { %539 = vmatprep.mubr.msk.f32.mxu0 %vm43_vm0, %v28_v4  ;;  %549 = vmatpush3.msra.mxu0 %v181_v5  ;;  %v486_v37 = vld [vmem:[%s724_s4] ss:$0 sm:$0xff] }
   0x8   :  { %562 = vmatprep.subr.mxu1 %v327_v11  ;;  %v495_v62 = vld [vmem:[%s725_s6] ss:$0 sm:$0xff] }
   0xa   :  { %540 = vmatmul.mubr.msk.f32.gmra.mxu0 %vm43_vm0, %v29_v6 }
   0xb   :  { %542 = vmatprep.mubr.msk.f32.mxu0 %vm43_vm0, %v30_v7 }
   0xe   :  { %543 = vmatmul.mubr.msk.f32.gmra.mxu0 %vm43_vm0, %v31_v8 }
   0xf   :  { %545 = vmatprep.mubr.msk.f32.mxu0 %vm43_vm0, %v32_v9 }
  0x12   :  { %546 = vmatmul.mubr.msk.f32.gmra.mxu0 %vm43_vm0, %v33_v10 }
  0xc6   :  { %v538_v13 = vpop.f32.mrf.mxu0 }
  0xc7   :  { %v140_v14 = vadd.f32 %v538_v13, %v477_v12 }
  0xc8   :  { %v134_v15 = vpop.f32.mrf.mxu0 }
  0xc9   :  { %v135_v16 = vadd.f32 %v477_v12, %v134_v15  ;;  %v174_v19 = vmax.f32 %v140_v14, 0.0 }
  0xca   :  { %v541_v17 = vpop.f32.mrf.mxu0 }
  0xcb   :  { %v173_v18 = vmax.f32 %v135_v16, 0.0  ;;  %v150_v20 = vadd.f32 %v541_v17, %v477_v12 }
  0xcc   :  { %v144_v21 = vpop.f32.mrf.mxu0 }
  0xcd   :  { %v145_v22 = vadd.f32 %v477_v12, %v144_v21  ;;  %550 = vmatprep.mubr.msk.f32.mxu0 %vm189_vm1, %v173_v18  ;;  %v176_v25 = vmax.f32 %v150_v20, 0.0 }
  0xce   :  { %v544_v23 = vpop.f32.mrf.mxu0  ;;  %551 = vmatmul.mubr.msk.f32.vlgmr.msra.gmra.mxu0 %vm189_vm1, %v174_v19 }
  0xcf   :  { %v175_v24 = vmax.f32 %v145_v22, 0.0  ;;  %v160_v26 = vadd.f32 %v544_v23, %v477_v12 }
  0xd0   :  { %v154_v27 = vpop.f32.mrf.mxu0 }
  0xd1   :  { %v155_v28 = vadd.f32 %v477_v12, %v154_v27  ;;  %553 = vmatprep.mubr.msk.f32.mxu1 %vm189_vm1, %v175_v24  ;;  %v178_v31 = vmax.f32 %v160_v26, 0.0 }
  0xd2   :  { %v547_v29 = vpop.f32.mrf.mxu0  ;;  %554 = vmatmul.mubr.msk.f32.vlgmr.msra.gmra.mxu1 %vm189_vm1, %v176_v25 }
  0xd3   :  { %v177_v30 = vmax.f32 %v155_v28, 0.0  ;;  %563 = vmatpush3.msra.mxu1 %v327_v11  ;;  %v170_v32 = vadd.f32 %v547_v29, %v477_v12 }
  0xd4   :  { %v164_v33 = vpop.f32.mrf.mxu0 }
  0xd5   :  { %v165_v34 = vadd.f32 %v477_v12, %v164_v33  ;;  %556 = vmatprep.mubr.msk.f32.mxu1 %vm189_vm1, %v177_v30  ;;  %v180_v36 = vmax.f32 %v170_v32, 0.0 }
  0xd6   :  { %557 = vmatmul.mubr.msk.f32.gmra.mxu1 %vm189_vm1, %v178_v31 }
  0xd7   :  { %v179_v35 = vmax.f32 %v165_v34, 0.0 }
  0xd9   :  { %559 = vmatprep.mubr.msk.f32.mxu1 %vm189_vm1, %v179_v35 }
  0xda   :  { %560 = vmatmul.mubr.msk.f32.gmra.mxu1 %vm189_vm1, %v180_v36 }
 0x18e   :  { %v552_v38 = vpop.f32.mrf.mxu0 }
 0x18f   :  { %v286_v39 = vadd.f32 %v552_v38, %v486_v37 }
 0x190   :  { %v280_v40 = vpop.f32.mrf.mxu0 }
 0x191   :  { %v281_v41 = vadd.f32 %v486_v37, %v280_v40  ;;  %v320_v44 = vmax.f32 %v286_v39, 0.0 }
 0x192   :  { %v555_v42 = vpop.f32.mrf.mxu1 }
 0x193   :  { %v319_v43 = vmax.f32 %v281_v41, 0.0  ;;  %v296_v45 = vadd.f32 %v555_v42, %v486_v37 }
 0x194   :  { %v290_v46 = vpop.f32.mrf.mxu1 }
 0x195   :  { %v291_v47 = vadd.f32 %v486_v37, %v290_v46  ;;  %564 = vmatprep.mubr.msk.f32.mxu1 %vm189_vm1, %v319_v43  ;;  %v322_v50 = vmax.f32 %v296_v45, 0.0 }
 0x196   :  { %v558_v48 = vpop.f32.mrf.mxu1  ;;  %565 = vmatmul.mubr.msk.f32.vlgmr.msra.gmra.mxu1 %vm189_vm1, %v320_v44 }
 0x197   :  { %v321_v49 = vmax.f32 %v291_v47, 0.0  ;;  %v306_v51 = vadd.f32 %v558_v48, %v486_v37 }
 0x198   :  { %v300_v52 = vpop.f32.mrf.mxu1 }
 0x199   :  { %v301_v53 = vadd.f32 %v486_v37, %v300_v52  ;;  %567 = vmatprep.mubr.msk.f32.mxu1 %vm189_vm1, %v321_v49  ;;  %v324_v56 = vmax.f32 %v306_v51, 0.0 }
 0x19a   :  { %v561_v54 = vpop.f32.mrf.mxu1  ;;  %568 = vmatmul.mubr.msk.f32.gmra.mxu1 %vm189_vm1, %v322_v50 }
 0x19b   :  { %v323_v55 = vmax.f32 %v301_v53, 0.0  ;;  %v316_v57 = vadd.f32 %v561_v54, %v486_v37 }
 0x19c   :  { %v310_v58 = vpop.f32.mrf.mxu1 }
 0x19d   :  { %v311_v59 = vadd.f32 %v486_v37, %v310_v58  ;;  %570 = vmatprep.mubr.msk.f32.mxu1 %vm189_vm1, %v323_v55  ;;  %v326_v61 = vmax.f32 %v316_v57, 0.0 }
 0x19e   :  { %571 = vmatmul.mubr.msk.f32.gmra.mxu1 %vm189_vm1, %v324_v56 }
 0x19f   :  { %v325_v60 = vmax.f32 %v311_v59, 0.0 }
 0x1a1   :  { %573 = vmatprep.mubr.msk.f32.mxu1 %vm189_vm1, %v325_v60 }
 0x1a2   :  { %574 = vmatmul.mubr.msk.f32.gmra.mxu1 %vm189_vm1, %v326_v61 }
 0x256   :  { %v566_v63 = vpop.f32.mrf.mxu1 }
 0x257   :  { %v431_v0 = vadd.f32 %v566_v63, %v495_v62 }
 0x258   :  { %v425_v1 = vpop.f32.mrf.mxu1 }
 0x259   :  { %466 = vst.msk [vmem:[%s726_s7 + $0x8] sm:$0xff] %vm464_vm2, %v431_v0  ;;  %v426_v2 = vadd.f32 %v495_v62, %v425_v1 }
 0x25a   :  { %v569_v3 = vpop.f32.mrf.mxu1 }
 0x25b   :  { %465 = vst.msk [vmem:[%s726_s7] sm:$0xff] %vm464_vm2, %v426_v2  ;;  %v441_v4 = vadd.f32 %v569_v3, %v495_v62 }
 0x25c   :  { %v435_v5 = vpop.f32.mrf.mxu1 }
 0x25d   :  { %468 = vst.msk [vmem:[%s726_s7 + $0x18] sm:$0xff] %vm464_vm2, %v441_v4  ;;  %v436_v6 = vadd.f32 %v495_v62, %v435_v5 }
 0x25e   :  { %v572_v7 = vpop.f32.mrf.mxu1 }
 0x25f   :  { %467 = vst.msk [vmem:[%s726_s7 + $0x10] sm:$0xff] %vm464_vm2, %v436_v6  ;;  %v451_v8 = vadd.f32 %v572_v7, %v495_v62 }
 0x260   :  { %v445_v9 = vpop.f32.mrf.mxu1 }
 0x261   :  { %470 = vst.msk [vmem:[%s726_s7 + $0x28] sm:$0xff] %vm464_vm2, %v451_v8  ;;  %v446_v10 = vadd.f32 %v495_v62, %v445_v9 }
 0x262   :  { %v575_v11 = vpop.f32.mrf.mxu1 }
 0x263   :  { %469 = vst.msk [vmem:[%s726_s7 + $0x20] sm:$0xff] %vm464_vm2, %v446_v10  ;;  %v461_v12 = vadd.f32 %v575_v11, %v495_v62 }
 0x264   :  { %v455_v13 = vpop.f32.mrf.mxu1 }
 0x265   :  { %472 = vst.msk [vmem:[%s726_s7 + $0x38] sm:$0xff] %vm464_vm2, %v461_v12  ;;  %v456_v14 = vadd.f32 %v495_v62, %v455_v13 }
 0x267   :  { %471 = vst.msk [vmem:[%s726_s7 + $0x30] sm:$0xff] %vm464_vm2, %v456_v14 }

</bundles_post_ra>
